<compile_context>
chip_gen: v6e
topology: v6e:2x2x1
jax: 0.10.0
libtpu: 0.0.40
codegen_flags: <defaults>
</compile_context>

<pallas_src>
import jax
import jax.numpy as jnp
from jax.experimental import pallas as pl
from jax.experimental.pallas import tpu as pltpu


# ---------------------------------------------------------------------------
# Kernels
# ---------------------------------------------------------------------------

def _linear_kernel(x_ref, wT_ref, b_ref, o_ref):
    """y = x @ wT + b with the full (D_in, D_out) weight resident in VMEM."""
    x = x_ref[...]
    w = wT_ref[...]
    if x.dtype != w.dtype:
        # In-kernel cast (VPU, hidden under DMA).  With a bf16-stored weight this
        # drives the native-bf16 MXU with no extra HBM pass over x.
        x = x.astype(w.dtype)
    acc = jnp.dot(x, w, preferred_element_type=jnp.float32)
    acc = acc + b_ref[...].astype(jnp.float32)
    o_ref[...] = acc.astype(o_ref.dtype)


def _linear_kernel_ktiled(x_ref, wT_ref, b_ref, o_ref, acc_ref):
    """Same linear, contraction dim tiled; f32 accumulator in VMEM scratch."""
    k = pl.program_id(1)

    @pl.when(k == 0)
    def _():
        acc_ref[...] = jnp.zeros_like(acc_ref)

    x = x_ref[...]
    w = wT_ref[...]
    if x.dtype != w.dtype:
        x = x.astype(w.dtype)
    acc_ref[...] += jnp.dot(x, w, preferred_element_type=jnp.float32)

    @pl.when(k == pl.num_programs(1) - 1)
    def _():
        o_ref[...] = (acc_ref[...] + b_ref[...].astype(jnp.float32)).astype(o_ref.dtype)


# ---------------------------------------------------------------------------
# Tiling policy helpers
# ---------------------------------------------------------------------------

def _default_row_tile():
    # v7x: 2 TensorCores but only 64 MiB VMEM -> a 256-row tile lets medium problems
    # (M <= 512) still produce >= 2 grid steps so both cores engage.  Elsewhere 512
    # sits at ~85% of the measured HBM roofline.
    try:
        kind = jax.devices()[0].device_kind.lower()
    except Exception:  # pragma: no cover - defensive; never expected on TPU
        kind = ""
    return 256 if "v7" in kind else 512


def _pick_k_tile(d_in, d_out, w_itemsize, budget_bytes):
    """Largest multiple-of-128 tk dividing d_in whose weight K-slab fits the budget."""
    for tk in (2048, 1024, 512, 256, 128):
        if tk <= d_in and d_in % tk == 0 and 2 * tk * d_out * w_itemsize <= budget_bytes:
            return tk
    return None


# ---------------------------------------------------------------------------
# pallas_call wrappers
# ---------------------------------------------------------------------------

def _linear_2d(x2d, wT, b2d, out_dtype, *, tm, tk, vmem_limit_bytes,
               max_resident_weight_bytes):
    M, D_in = x2d.shape
    D_out = wT.shape[1]
    w_itemsize = jnp.dtype(wT.dtype).itemsize
    # The constant-index-map weight is double-buffered by the default pipeline.
    resident_weight_bytes = 2 * D_in * D_out * w_itemsize
    weight_fits = resident_weight_bytes <= max_resident_weight_bytes

    # --- Small path: whole problem in one VMEM block (latency-optimal). ---
    if M <= tm and tk is None and weight_fits:
        return pl.pallas_call(
            _linear_kernel,
            out_shape=jax.ShapeDtypeStruct((M, D_out), out_dtype),
            compiler_params=pltpu.CompilerParams(
                vmem_limit_bytes=vmem_limit_bytes,
            ),
        )(x2d, wT, b2d)

    num_m = pl.cdiv(M, tm)

    # Decide whether the weight needs contraction tiling (v7x large-D feasibility).
    if tk is None and not weight_fits:
        tk = _pick_k_tile(D_in, D_out, w_itemsize, max_resident_weight_bytes)
        # If D_in can't be cleanly tiled we fall back to the resident path.
        # TODO(synk): support ragged K via an explicitly zero-padded weight copy.

    if tk is None:
        # --- Resident-weight, row-tiled path: only x/out tiles stream. ---
        return pl.pallas_call(
            _linear_kernel,
            out_shape=jax.ShapeDtypeStruct((M, D_out), out_dtype),
            grid_spec=pl.GridSpec(
                grid=(num_m,),
                in_specs=[
                    # x tile marches over rows (streamed / double-buffered).
                    pl.BlockSpec((tm, D_in), lambda i: (i, 0)),
                    # Constant block index -> weight fetched once, stays resident.
                    pl.BlockSpec((D_in, D_out), lambda i: (0, 0)),
                    # Bias likewise resident.
                    pl.BlockSpec((1, D_out), lambda i: (0, 0)),
                ],
                out_specs=pl.BlockSpec((tm, D_out), lambda i: (i, 0)),
            ),
            compiler_params=pltpu.CompilerParams(
                # Independent row tiles: v7x's two TensorCores split the grid.
                dimension_semantics=("parallel",),
                vmem_limit_bytes=vmem_limit_bytes,
            ),
        )(x2d, wT, b2d)

    # --- K-tiled accumulator path (large D_in / forced tk). ---
    assert D_in % tk == 0, f"tk={tk} must divide D_in={D_in}"
    num_k = D_in // tk
    return pl.pallas_call(
        _linear_kernel_ktiled,
        out_shape=jax.ShapeDtypeStruct((M, D_out), out_dtype),
        grid_spec=pltpu.PrefetchScalarGridSpec(
            num_scalar_prefetch=0,
            grid=(num_m, num_k),
            in_specs=[
                pl.BlockSpec((tm, tk), lambda i, k: (i, k)),
                pl.BlockSpec((tk, D_out), lambda i, k: (k, 0)),
                pl.BlockSpec((1, D_out), lambda i, k: (0, 0)),
            ],
            out_specs=pl.BlockSpec((tm, D_out), lambda i, k: (i, 0)),
            scratch_shapes=[pltpu.VMEM((tm, D_out), jnp.float32)],
        ),
        compiler_params=pltpu.CompilerParams(
            dimension_semantics=("parallel", "arbitrary"),
            vmem_limit_bytes=vmem_limit_bytes,
        ),
    )(x2d, wT, b2d)


def attention_forward(x, weight_t, bias, *, tm=None, tk=None, out_dtype=None,
                      vmem_limit_bytes=None,
                      max_resident_weight_bytes=16 * 1024 * 1024):
    """Forward pass of the PyTorch `Attention` module: y = x @ W.T + b.

    Args:
      x:        (B, S, D_in) activations (any float dtype; cast to the weight dtype
                happens inside the kernel, never in the wrapper).
      weight_t: (D_in, D_out) weight already in (in, out) layout — the PyTorch
                nn.Linear weight transposed (and optionally bf16-cast) ONCE by
                prepare_linear_params.
      bias:     (D_out,) bias.
      tm:       row tile.  Default is generation-aware (256 on v7x, else 512).
      tk:       optional contraction tile; if None it is chosen automatically only
                when the resident weight would not fit the VMEM budget.
      out_dtype: output dtype (default: x.dtype).  bf16 halves streamed store bytes.
      vmem_limit_bytes: optional Mosaic scoped-VMEM limit (useful on v7x).
      max_resident_weight_bytes: budget for the double-buffered resident weight
                before switching to the K-tiled accumulator path.
    """
    B, S, D_in = x.shape
    if tm is None:
        tm = _default_row_tile()
    if out_dtype is None:
        out_dtype = x.dtype

    x2d = x.reshape(B * S, D_in)
    b2d = bias.reshape(1, -1)

    out2d = _linear_2d(x2d, weight_t, b2d, out_dtype, tm=tm, tk=tk,
                       vmem_limit_bytes=vmem_limit_bytes,
                       max_resident_weight_bytes=max_resident_weight_bytes)
    return out2d.reshape(B, S, -1)


def prepare_linear_params(weight, bias, *, compute_dtype=None):
    """One-time conversion from the PyTorch (out, in) weight layout to (in, out).

    If compute_dtype (e.g. jnp.bfloat16) is given, the weight is stored in that
    dtype HERE, once — not per call — so every forward gets the native-bf16 MXU
    path and half the weight DMA/VMEM with zero per-call HBM overhead.
    """
    wT = jnp.asarray(weight).T
    if compute_dtype is not None:
        wT = wT.astype(compute_dtype)
    return wT, jnp.asarray(bias)


if __name__ == "__main__":
    # Small shapes consistent with the module: batch=2, seq=8, hidden(input_dim)=128.
    B, S, D = 2, 8, 128

    key = jax.random.PRNGKey(0)
    kx, kw, kb, kx2, kw2, kb2, kx3 = jax.random.split(key, 7)

    # Deterministic init mimicking nn.Linear's uniform(-1/sqrt(D), 1/sqrt(D)).
    bound = 1.0 / jnp.sqrt(jnp.float32(D))
    weight = jax.random.uniform(kw, (D, D), jnp.float32, -bound, bound)  # (out, in)
    bias = jax.random.uniform(kb, (D,), jnp.float32, -bound, bound)

    # Transpose hoisted out of the per-call path (done once, like caching params).
    weight_t, bias_p = prepare_linear_params(weight, bias)

    # --- Test 1: tiny shape -> grid-less single-block path (latency-optimal). ---
    x = jax.random.normal(kx, (B, S, D), jnp.float32)
    out = jax.block_until_ready(attention_forward(x, weight_t, bias_p))
    ref = x @ weight.T + bias
    assert out.shape == (B, S, D)
    assert jnp.allclose(out, ref, atol=1e-5, rtol=1e-5), "small-path mismatch"

    # --- Test 2: ragged M -> row-tiled path, NO pad / NO slice; the final partial
    #             block's out-of-bounds rows are masked on store by Pallas. ---
    B2, S2 = 4, 300                       # M = 1200, not a multiple of tm
    x_big = jax.random.normal(kx2, (B2, S2, D), jnp.float32)
    out_big = jax.block_until_ready(
        attention_forward(x_big, weight_t, bias_p, tm=512))
    ref_big = x_big @ weight.T + bias
    assert out_big.shape == (B2, S2, D)
    assert jnp.allclose(out_big, ref_big, atol=1e-4, rtol=1e-4), "tiled-path mismatch"

    # --- Test 3: bf16-stored weight (one-time cast) + in-kernel x cast. ---
    weight_t_bf16, _ = prepare_linear_params(weight, bias, compute_dtype=jnp.bfloat16)
    out_bf16 = jax.block_until_ready(
        attention_forward(x_big, weight_t_bf16, bias_p, tm=512))
    assert out_bf16.shape == (B2, S2, D)
    assert jnp.allclose(out_bf16, ref_big, atol=5e-2, rtol=5e-2), "bf16-path mismatch"

    # --- Test 4: K-tiled accumulator path (forced tk), ragged M as well. ---
    D2 = 256
    bound2 = 1.0 / jnp.sqrt(jnp.float32(D2))
    weight2 = jax.random.uniform(kw2, (D2, D2), jnp.float32, -bound2, bound2)
    bias2 = jax.random.uniform(kb2, (D2,), jnp.float32, -bound2, bound2)
    w2_t, b2_p = prepare_linear_params(weight2, bias2)
    x_k = jax.random.normal(kx3, (2, 200, D2), jnp.float32)   # M = 400 (ragged vs tm)
    out_k = jax.block_until_ready(
        attention_forward(x_k, w2_t, b2_p, tm=256, tk=128))
    ref_k = x_k @ weight2.T + bias2
    assert out_k.shape == (2, 200, D2)
    assert jnp.allclose(out_k, ref_k, atol=1e-4, rtol=1e-4), "k-tiled-path mismatch"

    print("KERNEL_OK")
</pallas_src>

<mosaic_0001>
module attributes {stable_mosaic.version = 11 : i64} {
  func.func @_linear_kernel(%arg0: memref<16x128xf32, #tpu.memory_space<vmem>>, %arg1: memref<128x128xf32, #tpu.memory_space<vmem>>, %arg2: memref<1x128xf32, #tpu.memory_space<vmem>>, %arg3: memref<16x128xf32, #tpu.memory_space<vmem>>) attributes {dimension_semantics = [], scalar_prefetch = 0 : i64, scratch_operands = 0 : i64, tpu.core_type = #tpu.core_type<tc>} {
    %c0 = arith.constant 0 : index
    %c0_0 = arith.constant 0 : index
    %0 = vector.load %arg0[%c0, %c0_0] : memref<16x128xf32, #tpu.memory_space<vmem>>, vector<16x128xf32>
    %c0_1 = arith.constant 0 : index
    %c0_2 = arith.constant 0 : index
    %1 = vector.load %arg1[%c0_1, %c0_2] : memref<128x128xf32, #tpu.memory_space<vmem>>, vector<128x128xf32>
    %cst = arith.constant dense<0.000000e+00> : vector<16x128xf32>
    %2 = tpu.matmul %0, %1, %cst {dimension_numbers = #tpu.dot_dimension_numbers<[1], [0], [0], [1], [0, 0, 1, 1], [], []>} : vector<16x128xf32>, vector<128x128xf32>, vector<16x128xf32> -> vector<16x128xf32>
    %c0_3 = arith.constant 0 : index
    %c0_4 = arith.constant 0 : index
    %3 = vector.load %arg2[%c0_3, %c0_4] : memref<1x128xf32, #tpu.memory_space<vmem>>, vector<1x128xf32>
    %4 = vector.broadcast %3 : vector<1x128xf32> to vector<16x128xf32>
    %5 = arith.addf %2, %4 : vector<16x128xf32>
    %c0_5 = arith.constant 0 : index
    %c0_6 = arith.constant 0 : index
    %6 = vector.load %arg3[%c0_5, %c0_6] : memref<16x128xf32, #tpu.memory_space<vmem>>, vector<16x128xf32>
    tpu.vector_store %arg3[%c0_5, %c0_6], %5 {strides = array<i32>} : memref<16x128xf32, #tpu.memory_space<vmem>>, vector<16x128xf32>,
    return
  }
}

</mosaic_0001>

<bundles_post_ra>
// kernel: tpu_custom_call.1
= control target key start
LH: loop header
LB: loop body
LE: loop exit
PB: predicated region body
PF: predicated region fallthrough
CT: control target
= control target key end

     0   :  { %8 = vsyncpa [#allocation3], 0  ;;  %s334_s0 = inlined_call_operand.hbm [shape: f32[16,128], index: 0, kind: input, shape index: {}]   ;;  %s335_s1 = inlined_call_operand.hbm [shape: f32[128,128], index: 1, kind: input, shape index: {}]   ;;  %s336_s2 = inlined_call_operand.vmem [shape: f32[1,128], index: 2, kind: input, shape index: {}]   ;;  %s337_s3 = inlined_call_operand.hbm [shape: f32[16,128], index: 3, kind: output, shape index: {}]  }
   0x1   :  { %9 = vsyncpa [#allocation6], 0 }
   0x2   :  { %10 = vsyncpa [#allocation4], 0  ;;  %s288_s12 = smov [#allocation2]  }
   0x3   :  { %s16_s13 = sshll.u32 %s288_s12, 4  ;;  %s17_s13 = int_to_ptr.vmem [resolvable:$true] %s16_s13 }
   0x4   :  { %s230_s14 = scalar_lea.vmem %s17_s13, 256  ;;  %p235_p1 = scmp.lt.s32.totalorder %s17_s13, %s17_s13 }
   0x5   :  { %p231_p0 = scmp.ne.s32.totalorder %s17_s13, %s230_s14  ;;  %p236_p2 = scmp.lt.s32.totalorder %s230_s14, %s230_s14 }
   0x7   :  { %p237_p3 = por %p236_p2, %p235_p1 }
   0x9   :  { %p238_p4 = pnand %p237_p3, %p231_p0 }
   0xb   :  { %241 = shalt.err (!%p238_p4)
}
   0xc   :  { %s289_s15 = smov 128   ;;  %s290_s16 = smov 8  }
   0xd   :  { %22 = dma.hbm_to_vmem [thread:$0]  %s334_s0, 256, %s17_s13, [#allocation3], %s289_s15, %s289_s15, %s290_s16  }
   0xe   :  { %s291_s19 = smov [#allocation5]  }
   0xf   :  { %s28_s20 = sshll.u32 %s291_s19, 4  ;;  %s29_s20 = int_to_ptr.vmem [resolvable:$true] %s28_s20 }
  0x10   :  { %s250_s21 = scalar_lea.vmem %s29_s20, 2048  ;;  %p255_p6 = scmp.lt.s32.totalorder %s29_s20, %s29_s20 }
  0x11   :  { %p251_p5 = scmp.ne.s32.totalorder %s29_s20, %s250_s21  ;;  %p256_p7 = scmp.lt.s32.totalorder %s250_s21, %s250_s21 }
  0x13   :  { %p257_p8 = por %p256_p7, %p255_p6 }
  0x15   :  { %p258_p9 = pnand %p257_p8, %p251_p5 }
  0x17   :  { %261 = shalt.err (!%p258_p9)
}
  0x18   :  { %34 = dma.hbm_to_vmem [thread:$0]  %s335_s1, 2048, %s29_s20, [#allocation6], %s289_s15, %s289_s15, %s290_s16  }
  0x19   :  { %282 = dma.done.wait [#allocation3], 256  }
  0x1a   :  { %283 = vsyncadd [#allocation3], 4294967040 }
  0x1b   :  { %284 = dma.done.wait [#allocation6], 2048  }
  0x1c   :  { %285 = vsyncadd [#allocation6], 4294965248  ;;  %v60_v0 = vld [vmem:[#allocation5 + $0x78] sm:$0xff]  ;;  %v59_v1 = vld [vmem:[#allocation5 + $0x70] sm:$0xff]  ;;  %s292_s24 = smov [#allocation7]  }
  0x1d   :  { %182 = vmatprep.subr.mxu0 %v60_v0  ;;  %v58_v2 = vld [vmem:[#allocation5 + $0x68] sm:$0xff]  ;;  %v57_v3 = vld [vmem:[#allocation5 + $0x60] sm:$0xff]  ;;  %v43_v4 = vld [vmem:[#allocation2] sm:$0xff]  ;;  %s150_s25 = sshll.u32 %s292_s24, 4  ;;  %s151_s25 = int_to_ptr.vmem [resolvable:$true] %s150_s25 }
  0x1e   :  { %183 = vmatpush3.msra.mxu0 %v60_v0  ;;  %v56_v5 = vld [vmem:[#allocation5 + $0x58] sm:$0xff]  ;;  %214 = vmatprep.mubr.f32.mxu0 %v43_v4  ;;  %v55_v6 = vld [vmem:[#allocation5 + $0x50] sm:$0xff]  ;;  %v54_v7 = vld [vmem:[#allocation5 + $0x48] sm:$0xff]  ;;  %s262_s26 = scalar_lea.vmem %s151_s25, 256  ;;  %p267_p11 = scmp.lt.s32.totalorder %s151_s25, %s151_s25 }
  0x1f   :  { %184 = vmatprep.subr.mxu0 %v59_v1  ;;  %v53_v8 = vld [vmem:[#allocation5 + $0x40] sm:$0xff]  ;;  %v52_v9 = vld [vmem:[#allocation5 + $0x38] sm:$0xff]  ;;  %v51_v10 = vld [vmem:[#allocation5 + $0x30] sm:$0xff]  ;;  %p263_p10 = scmp.ne.s32.totalorder %s151_s25, %s262_s26  ;;  %p268_p12 = scmp.lt.s32.totalorder %s262_s26, %s262_s26 }
  0x20   :  { %185 = vmatpush3.msra.mxu0 %v59_v1  ;;  %v50_v11 = vld [vmem:[#allocation5 + $0x28] sm:$0xff]  ;;  %v49_v12 = vld [vmem:[#allocation5 + $0x20] sm:$0xff]  ;;  %v48_v13 = vld [vmem:[#allocation5 + $0x18] sm:$0xff] }
  0x21   :  { %186 = vmatprep.subr.mxu0 %v58_v2  ;;  %v47_v14 = vld [vmem:[#allocation5 + $0x10] sm:$0xff]  ;;  %v46_v15 = vld [vmem:[#allocation5 + $0x8] sm:$0xff]  ;;  %v45_v16 = vld [vmem:[#allocation5] sm:$0xff]  ;;  %p269_p13 = por %p268_p12, %p267_p11 }
  0x22   :  { %187 = vmatpush3.msra.mxu0 %v58_v2  ;;  %v44_v17 = vld [vmem:[#allocation2 + $0x8] sm:$0xff]  ;;  %v163_v18 = vld [vmem:[%s336_s2] ss:$0 sm:$0xff] }
  0x23   :  { %188 = vmatprep.subr.mxu0 %v57_v3  ;;  %p270_p0 = pnand %p269_p13, %p263_p10 }
  0x24   :  { %189 = vmatpush3.msra.mxu0 %v57_v3 }
  0x25   :  { %190 = vmatprep.subr.mxu0 %v56_v5 }
  0x26   :  { %191 = vmatpush3.msra.mxu0 %v56_v5 }
  0x27   :  { %192 = vmatprep.subr.mxu0 %v55_v6 }
  0x28   :  { %193 = vmatpush3.msra.mxu0 %v55_v6 }
  0x29   :  { %194 = vmatprep.subr.mxu0 %v54_v7 }
  0x2a   :  { %195 = vmatpush3.msra.mxu0 %v54_v7 }
  0x2b   :  { %196 = vmatprep.subr.mxu0 %v53_v8 }
  0x2c   :  { %197 = vmatpush3.msra.mxu0 %v53_v8 }
  0x2d   :  { %198 = vmatprep.subr.mxu0 %v52_v9 }
  0x2e   :  { %199 = vmatpush3.msra.mxu0 %v52_v9 }
  0x2f   :  { %200 = vmatprep.subr.mxu0 %v51_v10 }
  0x30   :  { %201 = vmatpush3.msra.mxu0 %v51_v10 }
  0x31   :  { %202 = vmatprep.subr.mxu0 %v50_v11 }
  0x32   :  { %203 = vmatpush3.msra.mxu0 %v50_v11 }
  0x33   :  { %204 = vmatprep.subr.mxu0 %v49_v12 }
  0x34   :  { %205 = vmatpush3.msra.mxu0 %v49_v12 }
  0x35   :  { %206 = vmatprep.subr.mxu0 %v48_v13 }
  0x36   :  { %207 = vmatpush3.msra.mxu0 %v48_v13 }
  0x37   :  { %208 = vmatprep.subr.mxu0 %v47_v14 }
  0x38   :  { %209 = vmatpush3.msra.mxu0 %v47_v14 }
  0x39   :  { %210 = vmatprep.subr.mxu0 %v46_v15 }
  0x3a   :  { %211 = vmatpush3.msra.mxu0 %v46_v15 }
  0x3b   :  { %212 = vmatprep.subr.mxu0 %v45_v16 }
  0x3c   :  { %213 = vmatpush3.msra.mxu0 %v45_v16 }
  0x3d   :  { %215 = vmatmul.mubr.f32.vlgmr.msra.gmra.mxu0 %v44_v17 }
  0xfd   :  { %v216_v19 = vpop.f32.mrf.mxu0 }
  0xfe   :  { %v140_v20 = vadd.f32 %v216_v19, %v163_v18 }
  0xff   :  { %v134_v21 = vpop.f32.mrf.mxu0 }
 0x100   :  { %144 = vst [vmem:[#allocation7 + $0x8] sm:$0xff] %v140_v20  ;;  %v135_v22 = vadd.f32 %v163_v18, %v134_v21 }
 0x102   :  { %143 = vst [vmem:[#allocation7] sm:$0xff] %v135_v22 }
 0x103   :  { %273 = shalt.err (!%p270_p0)
}
 0x104   :  { %156 = dma.vmem_to_hbm [thread:$0]  %s151_s25, 256, %s337_s3, [#allocation4], %s289_s15, %s289_s15, %s290_s16  }
 0x105   :  { %286 = dma.done.wait [#allocation4], 256  }
 0x106   :  { %287 = vsyncadd [#allocation4], 4294967040 }
 0x107   :  { %160 = vsyncpa [#allocation3], 1 }
 0x108   :  { %161 = vsyncpa [#allocation6], 1 }
 0x109   :  { %162 = vsyncpa [#allocation4], 1 }

</bundles_post_ra>
